<compile_context>
chip_gen: v6e
topology: v6e:2x2x1
jax: 0.10.0
libtpu: 0.0.40
codegen_flags: <defaults>
</compile_context>

<pallas_src>
import jax
import jax.numpy as jnp
from jax import lax
from jax.experimental import pallas as pl
from jax.experimental.pallas import tpu as pltpu

NUM_MODELS = 5
FEATURE_DIM = 256
HIDDEN = 1024
IN_DIM = NUM_MODELS * FEATURE_DIM  # 1280


def ensemble_head_kernel(cat_ref, w_ref, b_ref, out_ref):
    """out = cat @ W_eff + b_eff   (single fused affine head).

    cat_ref : (B, IN_DIM)   full block, resident in VMEM
    w_ref   : (IN_DIM, 1)   folded W1 @ W2
    b_ref   : (1, 1)        folded b1 @ W2 + b2
    out_ref : (B, 1)
    """
    out_ref[...] = (
        jnp.dot(cat_ref[...], w_ref[...], preferred_element_type=jnp.float32)
        + b_ref[...]
    )


def fuse_head_params(w1, b1, w2, b2):
    """One-time fold of Linear(1280->1024) -> Dropout(eval) -> Linear(1024->1).

    Exact in eval mode (Dropout is identity).  HIGHEST precision keeps the
    fold numerically equivalent to the unfused f32 reference.
    """
    hp = lax.Precision.HIGHEST
    w_eff = jnp.dot(w1, w2, precision=hp)          # [IN_DIM, 1]
    b_eff = jnp.dot(b1, w2, precision=hp) + b2     # [1, 1]
    return w_eff, b_eff


def ensemble_head(cat, w_eff, b_eff):
    """cat: [B, IN_DIM] float32 -> [B, 1] float32, one grid step."""
    B, C = cat.shape
    assert C == IN_DIM
    return pl.pallas_call(
        ensemble_head_kernel,
        out_shape=jax.ShapeDtypeStruct((B, 1), jnp.float32),
        grid_spec=pl.GridSpec(
            grid=(1,),
            in_specs=[
                pl.BlockSpec((B, C), lambda i: (0, 0)),    # cat
                pl.BlockSpec((C, 1), lambda i: (0, 0)),    # W_eff
                pl.BlockSpec((1, 1), lambda i: (0, 0)),    # b_eff
            ],
            out_specs=pl.BlockSpec((B, 1), lambda i: (0, 0)),
        ),
        compiler_params=pltpu.CompilerParams(
            dimension_semantics=("arbitrary",)),
    )(cat, w_eff, b_eff)


def reference_head(cat, w1, b1, w2, b2):
    hp = lax.Precision.HIGHEST
    return jnp.dot(jnp.dot(cat, w1, precision=hp) + b1, w2, precision=hp) + b2


if __name__ == "__main__":
    key = jax.random.PRNGKey(0)
    B = 8

    # TODO(synk): TextCNN/LSTM/GRU/LSTMCNN/GRUCNN definitions are not provided;
    # simulate their [B, FEATURE_DIM] feature outputs deterministically.
    k_feat, k_w1, k_b1, k_w2, k_b2 = jax.random.split(key, 5)
    feats = [
        jax.random.normal(jax.random.fold_in(k_feat, m), (B, FEATURE_DIM),
                          dtype=jnp.float32)
        for m in range(NUM_MODELS)
    ]
    # torch.cat((...), 1)
    cat = jnp.concatenate(feats, axis=1)  # [B, 1280]

    # nn.Linear weights, stored pre-transposed as [in, out].
    w1 = jax.random.normal(k_w1, (IN_DIM, HIDDEN), dtype=jnp.float32) * (IN_DIM ** -0.5)
    b1 = jax.random.normal(k_b1, (1, HIDDEN), dtype=jnp.float32) * 0.01
    w2 = jax.random.normal(k_w2, (HIDDEN, 1), dtype=jnp.float32) * (HIDDEN ** -0.5)
    b2 = jax.random.normal(k_b2, (1, 1), dtype=jnp.float32) * 0.01

    # One-time parameter fold (parameters are frozen in the original module).
    w_eff, b_eff = fuse_head_params(w1, b1, w2, b2)
    w_eff = jax.block_until_ready(w_eff)

    out = ensemble_head(cat, w_eff, b_eff)
    out = jax.block_until_ready(out)

    ref = reference_head(cat, w1, b1, w2, b2)
    assert out.shape == (B, 1)
    assert jnp.allclose(out, ref, atol=1e-3, rtol=1e-3), "mismatch vs reference"

    print("KERNEL_OK")
</pallas_src>

<mosaic_0001>
module attributes {stable_mosaic.version = 11 : i64} {
  func.func @ensemble_head_kernel(%arg0: i32, %arg1: memref<8x1280xf32, #tpu.memory_space<vmem>>, %arg2: memref<1280x1xf32, #tpu.memory_space<vmem>>, %arg3: memref<1x1xf32, #tpu.memory_space<vmem>>, %arg4: memref<8x1xf32, #tpu.memory_space<vmem>>) attributes {dimension_semantics = [#tpu.dimension_semantics<arbitrary>], iteration_bounds = array<i64: 1>, scalar_prefetch = 0 : i64, scratch_operands = 0 : i64, tpu.core_type = #tpu.core_type<tc>, window_params = [{pipeline_mode = #tpu.pipeline_mode<synchronous>, transform_indices = @transform_0, window_bounds = array<i64: 8, 1280>}, {pipeline_mode = #tpu.pipeline_mode<synchronous>, transform_indices = @transform_1, window_bounds = array<i64: 1280, 1>}, {pipeline_mode = #tpu.pipeline_mode<synchronous>, transform_indices = @transform_2, window_bounds = array<i64: 1, 1>}, {pipeline_mode = #tpu.pipeline_mode<synchronous>, transform_indices = @transform_3, window_bounds = array<i64: 8, 1>}]} {
    %c0 = arith.constant 0 : index
    %c0_0 = arith.constant 0 : index
    %0 = vector.load %arg1[%c0, %c0_0] : memref<8x1280xf32, #tpu.memory_space<vmem>>, vector<8x1280xf32>
    %c0_1 = arith.constant 0 : index
    %c0_2 = arith.constant 0 : index
    %1 = vector.load %arg2[%c0_1, %c0_2] : memref<1280x1xf32, #tpu.memory_space<vmem>>, vector<1280x1xf32>
    %cst = arith.constant dense<0.000000e+00> : vector<8x1xf32>
    %2 = tpu.matmul %0, %1, %cst {dimension_numbers = #tpu.dot_dimension_numbers<[1], [0], [0], [1], [0, 0, 1, 1], [], []>} : vector<8x1280xf32>, vector<1280x1xf32>, vector<8x1xf32> -> vector<8x1xf32>
    %c0_3 = arith.constant 0 : index
    %c0_4 = arith.constant 0 : index
    %3 = vector.load %arg3[%c0_3, %c0_4] : memref<1x1xf32, #tpu.memory_space<vmem>>, vector<1x1xf32>
    %4 = vector.broadcast %3 : vector<1x1xf32> to vector<8x1xf32>
    %5 = arith.addf %2, %4 : vector<8x1xf32>
    %c0_5 = arith.constant 0 : index
    %c0_6 = arith.constant 0 : index
    %6 = vector.load %arg4[%c0_5, %c0_6] : memref<8x1xf32, #tpu.memory_space<vmem>>, vector<8x1xf32>
    tpu.vector_store %arg4[%c0_5, %c0_6], %5 {strides = array<i32>} : memref<8x1xf32, #tpu.memory_space<vmem>>, vector<8x1xf32>,
    return
  }
  func.func @transform_0(%arg0: i32) -> (i32, i32) {
    %c0_i32 = arith.constant 0 : i32
    %c0_i32_0 = arith.constant 0 : i32
    %c0_i32_1 = arith.constant 0 : i32
    return %c0_i32, %c0_i32_0 : i32, i32
  }
  func.func @transform_1(%arg0: i32) -> (i32, i32) {
    %c0_i32 = arith.constant 0 : i32
    %c0_i32_0 = arith.constant 0 : i32
    %c0_i32_1 = arith.constant 0 : i32
    return %c0_i32, %c0_i32_0 : i32, i32
  }
  func.func @transform_2(%arg0: i32) -> (i32, i32) {
    %c0_i32 = arith.constant 0 : i32
    %c0_i32_0 = arith.constant 0 : i32
    %c0_i32_1 = arith.constant 0 : i32
    return %c0_i32, %c0_i32_0 : i32, i32
  }
  func.func @transform_3(%arg0: i32) -> (i32, i32) {
    %c0_i32 = arith.constant 0 : i32
    %c0_i32_0 = arith.constant 0 : i32
    %c0_i32_1 = arith.constant 0 : i32
    return %c0_i32, %c0_i32_0 : i32, i32
  }
}

</mosaic_0001>

<bundles_post_ra>
// kernel: tpu_custom_call.1
= control target key start
LH: loop header
LB: loop body
LE: loop exit
PB: predicated region body
PF: predicated region fallthrough
CT: control target
= control target key end

     0   :  { %vm543_vm0 = vcmask 7168   ;;  %s1261_s1 = inlined_call_operand.vmem [shape: f32[1280,1], index: 1, kind: input, shape index: {}]   ;;  %s1262_s0 = inlined_call_operand.vmem [shape: f32[8,1280], index: 0, kind: input, shape index: {}]   ;;  %s1263_s2 = inlined_call_operand.<no memory space> [shape: f32[1,1], index: 2, kind: input, shape index: {}]   ;;  %s1264_s3 = inlined_call_operand.vmem [shape: f32[8,1], index: 3, kind: output, shape index: {}]  }
   0x1   :  { %v57_v0 = vld [vmem:[%s1261_s1 + $0xf8] sm:$0xff]  ;;  %v56_v2 = vld [vmem:[%s1261_s1 + $0xf0] sm:$0xff]  ;;  %v55_v6 = vld [vmem:[%s1261_s1 + $0xe8] sm:$0xff] }
   0x2   :  { %v41_v1 = vld [vmem:[%s1261_s1 + $0x78] sm:$0xff]  ;;  %550 = vmatprep.subr.mxu0 %v57_v0  ;;  %v40_v4 = vld [vmem:[%s1261_s1 + $0x70] sm:$0xff]  ;;  %v39_v8 = vld [vmem:[%s1261_s1 + $0x68] sm:$0xff] }
   0x3   :  { %v89_v3 = vld [vmem:[%s1261_s1 + $0x1f8] sm:$0xff]  ;;  %551 = vmatpush3.msra.mxu0 %v41_v1  ;;  %v88_v7 = vld [vmem:[%s1261_s1 + $0x1f0] sm:$0xff]  ;;  %v87_v10 = vld [vmem:[%s1261_s1 + $0x1e8] sm:$0xff] }
   0x4   :  { %v73_v5 = vld [vmem:[%s1261_s1 + $0x178] sm:$0xff]  ;;  %585 = vmatprep.subr.mxu1 %v89_v3  ;;  %552 = vmatprep.subr.mxu0 %v56_v2  ;;  %v72_v9 = vld [vmem:[%s1261_s1 + $0x170] sm:$0xff]  ;;  %v54_v11 = vld [vmem:[%s1261_s1 + $0xe0] sm:$0xff] }
   0x5   :  { %586 = vmatpush3.msra.mxu1 %v73_v5  ;;  %553 = vmatpush3.msra.mxu0 %v40_v4  ;;  %v71_v12 = vld [vmem:[%s1261_s1 + $0x168] sm:$0xff]  ;;  %v38_v13 = vld [vmem:[%s1261_s1 + $0x60] sm:$0xff]  ;;  %v53_v15 = vld [vmem:[%s1261_s1 + $0xd8] sm:$0xff] }
   0x6   :  { %587 = vmatprep.subr.mxu1 %v88_v7  ;;  %554 = vmatprep.subr.mxu0 %v55_v6  ;;  %v86_v14 = vld [vmem:[%s1261_s1 + $0x1e0] sm:$0xff]  ;;  %v37_v17 = vld [vmem:[%s1261_s1 + $0x58] sm:$0xff]  ;;  %v52_v19 = vld [vmem:[%s1261_s1 + $0xd0] sm:$0xff] }
   0x7   :  { %588 = vmatpush3.msra.mxu1 %v72_v9  ;;  %555 = vmatpush3.msra.mxu0 %v39_v8  ;;  %v70_v16 = vld [vmem:[%s1261_s1 + $0x160] sm:$0xff]  ;;  %v85_v18 = vld [vmem:[%s1261_s1 + $0x1d8] sm:$0xff]  ;;  %v36_v21 = vld [vmem:[%s1261_s1 + $0x50] sm:$0xff] }
   0x8   :  { %589 = vmatprep.subr.mxu1 %v87_v10  ;;  %556 = vmatprep.subr.mxu0 %v54_v11  ;;  %v69_v20 = vld [vmem:[%s1261_s1 + $0x158] sm:$0xff]  ;;  %v84_v22 = vld [vmem:[%s1261_s1 + $0x1d0] sm:$0xff]  ;;  %v51_v23 = vld [vmem:[%s1261_s1 + $0xc8] sm:$0xff] }
   0x9   :  { %590 = vmatpush3.msra.mxu1 %v71_v12  ;;  %557 = vmatpush3.msra.mxu0 %v38_v13  ;;  %v68_v24 = vld [vmem:[%s1261_s1 + $0x150] sm:$0xff]  ;;  %v35_v25 = vld [vmem:[%s1261_s1 + $0x48] sm:$0xff]  ;;  %v50_v27 = vld [vmem:[%s1261_s1 + $0xc0] sm:$0xff] }
   0xa   :  { %591 = vmatprep.subr.mxu1 %v86_v14  ;;  %558 = vmatprep.subr.mxu0 %v53_v15  ;;  %v83_v26 = vld [vmem:[%s1261_s1 + $0x1c8] sm:$0xff]  ;;  %v34_v29 = vld [vmem:[%s1261_s1 + $0x40] sm:$0xff]  ;;  %v49_v31 = vld [vmem:[%s1261_s1 + $0xb8] sm:$0xff] }
   0xb   :  { %592 = vmatpush3.msra.mxu1 %v70_v16  ;;  %559 = vmatpush3.msra.mxu0 %v37_v17  ;;  %v67_v28 = vld [vmem:[%s1261_s1 + $0x148] sm:$0xff]  ;;  %v82_v30 = vld [vmem:[%s1261_s1 + $0x1c0] sm:$0xff]  ;;  %v33_v33 = vld [vmem:[%s1261_s1 + $0x38] sm:$0xff] }
   0xc   :  { %593 = vmatprep.subr.mxu1 %v85_v18  ;;  %560 = vmatprep.subr.mxu0 %v52_v19  ;;  %v66_v32 = vld [vmem:[%s1261_s1 + $0x140] sm:$0xff]  ;;  %v81_v34 = vld [vmem:[%s1261_s1 + $0x1b8] sm:$0xff]  ;;  %v48_v35 = vld [vmem:[%s1261_s1 + $0xb0] sm:$0xff] }
   0xd   :  { %594 = vmatpush3.msra.mxu1 %v69_v20  ;;  %561 = vmatpush3.msra.mxu0 %v36_v21  ;;  %v65_v36 = vld [vmem:[%s1261_s1 + $0x138] sm:$0xff]  ;;  %v32_v37 = vld [vmem:[%s1261_s1 + $0x30] sm:$0xff]  ;;  %v47_v39 = vld [vmem:[%s1261_s1 + $0xa8] sm:$0xff] }
   0xe   :  { %595 = vmatprep.subr.mxu1 %v84_v22  ;;  %562 = vmatprep.subr.mxu0 %v51_v23  ;;  %v80_v38 = vld [vmem:[%s1261_s1 + $0x1b0] sm:$0xff]  ;;  %v31_v41 = vld [vmem:[%s1261_s1 + $0x28] sm:$0xff]  ;;  %v46_v43 = vld [vmem:[%s1261_s1 + $0xa0] sm:$0xff] }
   0xf   :  { %596 = vmatpush3.msra.mxu1 %v68_v24  ;;  %563 = vmatpush3.msra.mxu0 %v35_v25  ;;  %v64_v40 = vld [vmem:[%s1261_s1 + $0x130] sm:$0xff]  ;;  %v79_v42 = vld [vmem:[%s1261_s1 + $0x1a8] sm:$0xff]  ;;  %v30_v45 = vld [vmem:[%s1261_s1 + $0x20] sm:$0xff] }
  0x10   :  { %597 = vmatprep.subr.mxu1 %v83_v26  ;;  %564 = vmatprep.subr.mxu0 %v50_v27  ;;  %v63_v44 = vld [vmem:[%s1261_s1 + $0x128] sm:$0xff]  ;;  %v78_v46 = vld [vmem:[%s1261_s1 + $0x1a0] sm:$0xff]  ;;  %v45_v47 = vld [vmem:[%s1261_s1 + $0x98] sm:$0xff] }
  0x11   :  { %598 = vmatpush3.msra.mxu1 %v67_v28  ;;  %565 = vmatpush3.msra.mxu0 %v34_v29  ;;  %v62_v48 = vld [vmem:[%s1261_s1 + $0x120] sm:$0xff]  ;;  %v29_v49 = vld [vmem:[%s1261_s1 + $0x18] sm:$0xff]  ;;  %v44_v51 = vld [vmem:[%s1261_s1 + $0x90] sm:$0xff] }
  0x12   :  { %599 = vmatprep.subr.mxu1 %v82_v30  ;;  %566 = vmatprep.subr.mxu0 %v49_v31  ;;  %v77_v50 = vld [vmem:[%s1261_s1 + $0x198] sm:$0xff]  ;;  %v28_v53 = vld [vmem:[%s1261_s1 + $0x10] sm:$0xff]  ;;  %v43_v55 = vld [vmem:[%s1261_s1 + $0x88] sm:$0xff] }
  0x13   :  { %600 = vmatpush3.msra.mxu1 %v66_v32  ;;  %567 = vmatpush3.msra.mxu0 %v33_v33  ;;  %v61_v52 = vld [vmem:[%s1261_s1 + $0x118] sm:$0xff]  ;;  %v76_v54 = vld [vmem:[%s1261_s1 + $0x190] sm:$0xff]  ;;  %v27_v57 = vld [vmem:[%s1261_s1 + $0x8] sm:$0xff] }
  0x14   :  { %601 = vmatprep.subr.mxu1 %v81_v34  ;;  %568 = vmatprep.subr.mxu0 %v48_v35  ;;  %v60_v56 = vld [vmem:[%s1261_s1 + $0x110] sm:$0xff]  ;;  %v75_v58 = vld [vmem:[%s1261_s1 + $0x188] sm:$0xff]  ;;  %v42_v59 = vld [vmem:[%s1261_s1 + $0x80] sm:$0xff] }
  0x15   :  { %602 = vmatpush3.msra.mxu1 %v65_v36  ;;  %569 = vmatpush3.msra.mxu0 %v32_v37  ;;  %v17_v60 = vld [vmem:[%s1262_s0 + $0x8] sm:$0xff]  ;;  %v26_v61 = vld [vmem:[%s1261_s1] sm:$0xff]  ;;  %v121_v1 = vld [vmem:[%s1261_s1 + $0x2f8] sm:$0xff] }
  0x16   :  { %603 = vmatprep.subr.mxu1 %v80_v38  ;;  %570 = vmatprep.subr.mxu0 %v47_v39  ;;  %v59_v62 = vld [vmem:[%s1261_s1 + $0x108] sm:$0xff]  ;;  %v16_v63 = vld [vmem:[%s1262_s0] sm:$0xff]  ;;  %v19_v3 = vld [vmem:[%s1262_s0 + $0x18] sm:$0xff] }
  0x17   :  { %604 = vmatpush3.msra.mxu1 %v64_v40  ;;  %571 = vmatpush3.msra.mxu0 %v31_v41  ;;  %v74_v0 = vld [vmem:[%s1261_s1 + $0x180] sm:$0xff]  ;;  %v105_v4 = vld [vmem:[%s1261_s1 + $0x278] sm:$0xff]  ;;  %v18_v5 = vld [vmem:[%s1262_s0 + $0x10] sm:$0xff] }
  0x18   :  { %605 = vmatprep.subr.mxu1 %v79_v42  ;;  %572 = vmatprep.subr.mxu0 %v46_v43  ;;  %v58_v2 = vld [vmem:[%s1261_s1 + $0x100] sm:$0xff]  ;;  %v120_v6 = vld [vmem:[%s1261_s1 + $0x2f0] sm:$0xff]  ;;  %v153_v7 = vld [vmem:[%s1261_s1 + $0x3f8] sm:$0xff] }
  0x19   :  { %606 = vmatpush3.msra.mxu1 %v63_v44  ;;  %573 = vmatpush3.msra.mxu0 %v30_v45  ;;  %v104_v8 = vld [vmem:[%s1261_s1 + $0x270] sm:$0xff]  ;;  %v137_v9 = vld [vmem:[%s1261_s1 + $0x378] sm:$0xff]  ;;  %v119_v10 = vld [vmem:[%s1261_s1 + $0x2e8] sm:$0xff] }
  0x1a   :  { %607 = vmatprep.subr.mxu1 %v78_v46  ;;  %574 = vmatprep.subr.mxu0 %v45_v47  ;;  %v152_v11 = vld [vmem:[%s1261_s1 + $0x3f0] sm:$0xff]  ;;  %v103_v12 = vld [vmem:[%s1261_s1 + $0x268] sm:$0xff]  ;;  %v118_v14 = vld [vmem:[%s1261_s1 + $0x2e0] sm:$0xff] }
  0x1b   :  { %608 = vmatpush3.msra.mxu1 %v62_v48  ;;  %575 = vmatpush3.msra.mxu0 %v29_v49  ;;  %v136_v13 = vld [vmem:[%s1261_s1 + $0x370] sm:$0xff]  ;;  %v151_v15 = vld [vmem:[%s1261_s1 + $0x3e8] sm:$0xff]  ;;  %v102_v16 = vld [vmem:[%s1261_s1 + $0x260] sm:$0xff] }
  0x1c   :  { %609 = vmatprep.subr.mxu1 %v77_v50  ;;  %576 = vmatprep.subr.mxu0 %v44_v51  ;;  %v135_v17 = vld [vmem:[%s1261_s1 + $0x368] sm:$0xff]  ;;  %v117_v18 = vld [vmem:[%s1261_s1 + $0x2d8] sm:$0xff]  ;;  %v150_v19 = vld [vmem:[%s1261_s1 + $0x3e0] sm:$0xff] }
  0x1d   :  { %610 = vmatpush3.msra.mxu1 %v61_v52  ;;  %577 = vmatpush3.msra.mxu0 %v28_v53  ;;  %v101_v20 = vld [vmem:[%s1261_s1 + $0x258] sm:$0xff]  ;;  %v134_v21 = vld [vmem:[%s1261_s1 + $0x360] sm:$0xff]  ;;  %v116_v22 = vld [vmem:[%s1261_s1 + $0x2d0] sm:$0xff] }
  0x1e   :  { %611 = vmatprep.subr.mxu1 %v76_v54  ;;  %578 = vmatprep.subr.mxu0 %v43_v55  ;;  %v149_v23 = vld [vmem:[%s1261_s1 + $0x3d8] sm:$0xff]  ;;  %v100_v24 = vld [vmem:[%s1261_s1 + $0x250] sm:$0xff]  ;;  %v115_v26 = vld [vmem:[%s1261_s1 + $0x2c8] sm:$0xff] }
  0x1f   :  { %612 = vmatpush3.msra.mxu1 %v60_v56  ;;  %579 = vmatpush3.msra.mxu0 %v27_v57  ;;  %v133_v25 = vld [vmem:[%s1261_s1 + $0x358] sm:$0xff]  ;;  %v148_v27 = vld [vmem:[%s1261_s1 + $0x3d0] sm:$0xff]  ;;  %v99_v28 = vld [vmem:[%s1261_s1 + $0x248] sm:$0xff] }
  0x20   :  { %613 = vmatprep.subr.mxu1 %v75_v58  ;;  %580 = vmatprep.subr.mxu0 %v42_v59  ;;  %v132_v29 = vld [vmem:[%s1261_s1 + $0x350] sm:$0xff]  ;;  %v114_v30 = vld [vmem:[%s1261_s1 + $0x2c0] sm:$0xff]  ;;  %v147_v31 = vld [vmem:[%s1261_s1 + $0x3c8] sm:$0xff] }
  0x21   :  { %257 = vmatprep.mubr.f32.mxu0 %v17_v60  ;;  %581 = vmatpush3.msra.mxu0 %v26_v61  ;;  %v98_v32 = vld [vmem:[%s1261_s1 + $0x240] sm:$0xff]  ;;  %v131_v33 = vld [vmem:[%s1261_s1 + $0x348] sm:$0xff]  ;;  %v113_v34 = vld [vmem:[%s1261_s1 + $0x2b8] sm:$0xff] }
  0x22   :  { %614 = vmatpush3.msra.mxu1 %v59_v62  ;;  %258 = vmatmul.mubr.f32.vlgmr.msra.gmra.mxu0 %v16_v63  ;;  %v146_v35 = vld [vmem:[%s1261_s1 + $0x3c0] sm:$0xff]  ;;  %v97_v36 = vld [vmem:[%s1261_s1 + $0x238] sm:$0xff]  ;;  %v112_v38 = vld [vmem:[%s1261_s1 + $0x2b0] sm:$0xff] }
  0x23   :  { %615 = vmatprep.subr.mxu1 %v74_v0  ;;  %620 = vmatprep.subr.mxu0 %v121_v1  ;;  %v130_v37 = vld [vmem:[%s1261_s1 + $0x340] sm:$0xff]  ;;  %v145_v39 = vld [vmem:[%s1261_s1 + $0x3b8] sm:$0xff]  ;;  %v96_v40 = vld [vmem:[%s1261_s1 + $0x230] sm:$0xff] }
  0x24   :  { %616 = vmatpush3.msra.mxu1 %v58_v2  ;;  %327 = vmatprep.mubr.f32.mxu1 %v19_v3  ;;  %v129_v41 = vld [vmem:[%s1261_s1 + $0x338] sm:$0xff]  ;;  %v111_v42 = vld [vmem:[%s1261_s1 + $0x2a8] sm:$0xff]  ;;  %v144_v43 = vld [vmem:[%s1261_s1 + $0x3b0] sm:$0xff] }
  0x25   :  { %621 = vmatpush3.msra.mxu0 %v105_v4  ;;  %328 = vmatmul.mubr.f32.vlgmr.msra.gmra.mxu1 %v18_v5  ;;  %v95_v44 = vld [vmem:[%s1261_s1 + $0x228] sm:$0xff]  ;;  %v128_v45 = vld [vmem:[%s1261_s1 + $0x330] sm:$0xff]  ;;  %v110_v46 = vld [vmem:[%s1261_s1 + $0x2a0] sm:$0xff] }
  0x26   :  { %622 = vmatprep.subr.mxu0 %v120_v6  ;;  %655 = vmatprep.subr.mxu1 %v153_v7  ;;  %v143_v47 = vld [vmem:[%s1261_s1 + $0x3a8] sm:$0xff]  ;;  %v94_v48 = vld [vmem:[%s1261_s1 + $0x220] sm:$0xff]  ;;  %v109_v50 = vld [vmem:[%s1261_s1 + $0x298] sm:$0xff] }
  0x27   :  { %623 = vmatpush3.msra.mxu0 %v104_v8  ;;  %656 = vmatpush3.msra.mxu1 %v137_v9  ;;  %v127_v49 = vld [vmem:[%s1261_s1 + $0x328] sm:$0xff]  ;;  %v142_v51 = vld [vmem:[%s1261_s1 + $0x3a0] sm:$0xff]  ;;  %v93_v52 = vld [vmem:[%s1261_s1 + $0x218] sm:$0xff] }
  0x28   :  { %624 = vmatprep.subr.mxu0 %v119_v10  ;;  %657 = vmatprep.subr.mxu1 %v152_v11  ;;  %v126_v53 = vld [vmem:[%s1261_s1 + $0x320] sm:$0xff]  ;;  %v108_v54 = vld [vmem:[%s1261_s1 + $0x290] sm:$0xff]  ;;  %v141_v55 = vld [vmem:[%s1261_s1 + $0x398] sm:$0xff] }
  0x29   :  { %625 = vmatpush3.msra.mxu0 %v103_v12  ;;  %658 = vmatpush3.msra.mxu1 %v136_v13  ;;  %v92_v56 = vld [vmem:[%s1261_s1 + $0x210] sm:$0xff]  ;;  %v125_v57 = vld [vmem:[%s1261_s1 + $0x318] sm:$0xff]  ;;  %v107_v58 = vld [vmem:[%s1261_s1 + $0x288] sm:$0xff] }
  0x2a   :  { %626 = vmatprep.subr.mxu0 %v118_v14  ;;  %659 = vmatprep.subr.mxu1 %v151_v15  ;;  %v140_v59 = vld [vmem:[%s1261_s1 + $0x390] sm:$0xff]  ;;  %v91_v60 = vld [vmem:[%s1261_s1 + $0x208] sm:$0xff]  ;;  %v106_v62 = vld [vmem:[%s1261_s1 + $0x280] sm:$0xff] }
  0x2b   :  { %627 = vmatpush3.msra.mxu0 %v102_v16  ;;  %660 = vmatpush3.msra.mxu1 %v135_v17  ;;  %v124_v61 = vld [vmem:[%s1261_s1 + $0x310] sm:$0xff]  ;;  %v139_v63 = vld [vmem:[%s1261_s1 + $0x388] sm:$0xff]  ;;  %v90_v0 = vld [vmem:[%s1261_s1 + $0x200] sm:$0xff] }
  0x2c   :  { %628 = vmatprep.subr.mxu0 %v117_v18  ;;  %661 = vmatprep.subr.mxu1 %v150_v19  ;;  %v21_v1 = vld [vmem:[%s1262_s0 + $0x28] sm:$0xff]  ;;  %v20_v3 = vld [vmem:[%s1262_s0 + $0x20] sm:$0xff]  ;;  %v185_v5 = vld [vmem:[%s1261_s1 + $0x4f8] sm:$0xff] }
  0x2d   :  { %629 = vmatpush3.msra.mxu0 %v101_v20  ;;  %662 = vmatpush3.msra.mxu1 %v134_v21  ;;  %v123_v2 = vld [vmem:[%s1261_s1 + $0x308] sm:$0xff]  ;;  %v138_v4 = vld [vmem:[%s1261_s1 + $0x380] sm:$0xff]  ;;  %v23_v7 = vld [vmem:[%s1262_s0 + $0x38] sm:$0xff] }
  0x2e   :  { %630 = vmatprep.subr.mxu0 %v116_v22  ;;  %663 = vmatprep.subr.mxu1 %v149_v23  ;;  %v122_v6 = vld [vmem:[%s1261_s1 + $0x300] sm:$0xff]  ;;  %v169_v8 = vld [vmem:[%s1261_s1 + $0x478] sm:$0xff]  ;;  %v22_v9 = vld [vmem:[%s1262_s0 + $0x30] sm:$0xff] }
  0x2f   :  { %631 = vmatpush3.msra.mxu0 %v100_v24  ;;  %664 = vmatpush3.msra.mxu1 %v133_v25  ;;  %v184_v10 = vld [vmem:[%s1261_s1 + $0x4f0] sm:$0xff]  ;;  %v25_v12 = vld [vmem:[%s1262_s0 + $0x48] sm:$0xff]  ;;  %v182_v15 = vld [vmem:[%s1261_s1 + $0x4e0] sm:$0xff] }
  0x30   :  { %632 = vmatprep.subr.mxu0 %v115_v26  ;;  %665 = vmatprep.subr.mxu1 %v148_v27  ;;  %v168_v11 = vld [vmem:[%s1261_s1 + $0x470] sm:$0xff]  ;;  %v183_v13 = vld [vmem:[%s1261_s1 + $0x4e8] sm:$0xff]  ;;  %v166_v16 = vld [vmem:[%s1261_s1 + $0x460] sm:$0xff] }
  0x31   :  { %633 = vmatpush3.msra.mxu0 %v99_v28  ;;  %666 = vmatpush3.msra.mxu1 %v132_v29  ;;  %v167_v14 = vld [vmem:[%s1261_s1 + $0x468] sm:$0xff]  ;;  %v181_v17 = vld [vmem:[%s1261_s1 + $0x4d8] sm:$0xff]  ;;  %v180_v19 = vld [vmem:[%s1261_s1 + $0x4d0] sm:$0xff] }
  0x32   :  { %634 = vmatprep.subr.mxu0 %v114_v30  ;;  %667 = vmatprep.subr.mxu1 %v147_v31  ;;  %v165_v18 = vld [vmem:[%s1261_s1 + $0x458] sm:$0xff]  ;;  %v164_v20 = vld [vmem:[%s1261_s1 + $0x450] sm:$0xff]  ;;  %v179_v21 = vld [vmem:[%s1261_s1 + $0x4c8] sm:$0xff] }
  0x33   :  { %635 = vmatpush3.msra.mxu0 %v98_v32  ;;  %668 = vmatpush3.msra.mxu1 %v131_v33  ;;  %v163_v22 = vld [vmem:[%s1261_s1 + $0x448] sm:$0xff]  ;;  %v178_v23 = vld [vmem:[%s1261_s1 + $0x4c0] sm:$0xff]  ;;  %v177_v25 = vld [vmem:[%s1261_s1 + $0x4b8] sm:$0xff] }
  0x34   :  { %636 = vmatprep.subr.mxu0 %v113_v34  ;;  %669 = vmatprep.subr.mxu1 %v146_v35  ;;  %v162_v24 = vld [vmem:[%s1261_s1 + $0x440] sm:$0xff]  ;;  %v161_v26 = vld [vmem:[%s1261_s1 + $0x438] sm:$0xff]  ;;  %v176_v27 = vld [vmem:[%s1261_s1 + $0x4b0] sm:$0xff] }
  0x35   :  { %637 = vmatpush3.msra.mxu0 %v97_v36  ;;  %670 = vmatpush3.msra.mxu1 %v130_v37  ;;  %v160_v28 = vld [vmem:[%s1261_s1 + $0x430] sm:$0xff]  ;;  %v175_v29 = vld [vmem:[%s1261_s1 + $0x4a8] sm:$0xff]  ;;  %v174_v31 = vld [vmem:[%s1261_s1 + $0x4a0] sm:$0xff] }
  0x36   :  { %638 = vmatprep.subr.mxu0 %v112_v38  ;;  %671 = vmatprep.subr.mxu1 %v145_v39  ;;  %v159_v30 = vld [vmem:[%s1261_s1 + $0x428] sm:$0xff]  ;;  %v158_v32 = vld [vmem:[%s1261_s1 + $0x420] sm:$0xff]  ;;  %v173_v33 = vld [vmem:[%s1261_s1 + $0x498] sm:$0xff] }
  0x37   :  { %639 = vmatpush3.msra.mxu0 %v96_v40  ;;  %672 = vmatpush3.msra.mxu1 %v129_v41  ;;  %v157_v34 = vld [vmem:[%s1261_s1 + $0x418] sm:$0xff]  ;;  %v172_v35 = vld [vmem:[%s1261_s1 + $0x490] sm:$0xff]  ;;  %v171_v37 = vld [vmem:[%s1261_s1 + $0x488] sm:$0xff]  ;;  %v8_v41 = vstv %s1263_s2 }
  0x38   :  { %640 = vmatprep.subr.mxu0 %v111_v42  ;;  %673 = vmatprep.subr.mxu1 %v144_v43  ;;  %v156_v36 = vld [vmem:[%s1261_s1 + $0x410] sm:$0xff]  ;;  %v155_v38 = vld [vmem:[%s1261_s1 + $0x408] sm:$0xff]  ;;  %v170_v39 = vld [vmem:[%s1261_s1 + $0x480] sm:$0xff]  ;;  %9 = vst [vmem:[#allocation2] sm:$0x1] %v8_v41 }
  0x39   :  { %641 = vmatpush3.msra.mxu0 %v95_v44  ;;  %674 = vmatpush3.msra.mxu1 %v128_v45  ;;  %v154_v40 = vld [vmem:[%s1261_s1 + $0x400] sm:$0xff] }
  0x3a   :  { %642 = vmatprep.subr.mxu0 %v110_v46  ;;  %675 = vmatprep.subr.mxu1 %v143_v47  ;;  %v24_v42 = vld [vmem:[%s1262_s0 + $0x40] sm:$0xff] }
  0x3b   :  { %643 = vmatpush3.msra.mxu0 %v94_v48  ;;  %676 = vmatpush3.msra.mxu1 %v127_v49 }
  0x3c   :  { %644 = vmatprep.subr.mxu0 %v109_v50  ;;  %677 = vmatprep.subr.mxu1 %v142_v51 }
  0x3d   :  { %645 = vmatpush3.msra.mxu0 %v93_v52  ;;  %678 = vmatpush3.msra.mxu1 %v126_v53 }
  0x3e   :  { %646 = vmatprep.subr.mxu0 %v108_v54  ;;  %679 = vmatprep.subr.mxu1 %v141_v55 }
  0x3f   :  { %647 = vmatpush3.msra.mxu0 %v92_v56  ;;  %680 = vmatpush3.msra.mxu1 %v125_v57  ;;  %v549_v48 = vld [vmem:[#allocation2] ss:$0 sm:$0xff] }
  0x40   :  { %648 = vmatprep.subr.mxu0 %v107_v58  ;;  %681 = vmatprep.subr.mxu1 %v140_v59 }
  0x41   :  { %649 = vmatpush3.msra.mxu0 %v91_v60  ;;  %682 = vmatpush3.msra.mxu1 %v124_v61 }
  0x42   :  { %650 = vmatprep.subr.mxu0 %v106_v62  ;;  %683 = vmatprep.subr.mxu1 %v139_v63 }
  0x43   :  { %651 = vmatpush3.msra.mxu0 %v90_v0  ;;  %397 = vmatprep.mubr.f32.mxu0 %v21_v1 }
  0x44   :  { %684 = vmatpush3.msra.mxu1 %v123_v2  ;;  %398 = vmatmul.mubr.f32.vlgmr.msra.gmra.mxu0 %v20_v3 }
  0x45   :  { %685 = vmatprep.subr.mxu1 %v138_v4  ;;  %690 = vmatprep.subr.mxu0 %v185_v5 }
  0x46   :  { %686 = vmatpush3.msra.mxu1 %v122_v6  ;;  %467 = vmatprep.mubr.f32.mxu1 %v23_v7 }
  0x47   :  { %691 = vmatpush3.msra.mxu0 %v169_v8  ;;  %468 = vmatmul.mubr.f32.vlgmr.msra.gmra.mxu1 %v22_v9 }
  0x48   :  { %692 = vmatprep.subr.mxu0 %v184_v10  ;;  %537 = vmatprep.mubr.f32.mxu0 %v25_v12 }
  0x49   :  { %693 = vmatpush3.msra.mxu0 %v168_v11 }
  0x4a   :  { %694 = vmatprep.subr.mxu0 %v183_v13 }
  0x4b   :  { %695 = vmatpush3.msra.mxu0 %v167_v14 }
  0x4c   :  { %696 = vmatprep.subr.mxu0 %v182_v15 }
  0x4d   :  { %697 = vmatpush3.msra.mxu0 %v166_v16 }
  0x4e   :  { %698 = vmatprep.subr.mxu0 %v181_v17 }
  0x4f   :  { %699 = vmatpush3.msra.mxu0 %v165_v18 }
  0x50   :  { %700 = vmatprep.subr.mxu0 %v180_v19 }
  0x51   :  { %701 = vmatpush3.msra.mxu0 %v164_v20 }
  0x52   :  { %702 = vmatprep.subr.mxu0 %v179_v21 }
  0x53   :  { %703 = vmatpush3.msra.mxu0 %v163_v22 }
  0x54   :  { %704 = vmatprep.subr.mxu0 %v178_v23 }
  0x55   :  { %705 = vmatpush3.msra.mxu0 %v162_v24 }
  0x56   :  { %706 = vmatprep.subr.mxu0 %v177_v25 }
  0x57   :  { %707 = vmatpush3.msra.mxu0 %v161_v26 }
  0x58   :  { %708 = vmatprep.subr.mxu0 %v176_v27 }
  0x59   :  { %709 = vmatpush3.msra.mxu0 %v160_v28 }
  0x5a   :  { %710 = vmatprep.subr.mxu0 %v175_v29 }
  0x5b   :  { %711 = vmatpush3.msra.mxu0 %v159_v30 }
  0x5c   :  { %712 = vmatprep.subr.mxu0 %v174_v31 }
  0x5d   :  { %713 = vmatpush3.msra.mxu0 %v158_v32 }
  0x5e   :  { %714 = vmatprep.subr.mxu0 %v173_v33 }
  0x5f   :  { %715 = vmatpush3.msra.mxu0 %v157_v34 }
  0x60   :  { %716 = vmatprep.subr.mxu0 %v172_v35 }
  0x61   :  { %717 = vmatpush3.msra.mxu0 %v156_v36 }
  0x62   :  { %718 = vmatprep.subr.mxu0 %v171_v37 }
  0x63   :  { %719 = vmatpush3.msra.mxu0 %v155_v38 }
  0x64   :  { %720 = vmatprep.subr.mxu0 %v170_v39 }
  0x65   :  { %721 = vmatpush3.msra.mxu0 %v154_v40 }
  0x66   :  { %538 = vmatmul.mubr.f32.vlgmr.msra.gmra.mxu0 %v24_v42 }
  0xe2   :  { %v582_v43 = vpop.f32.mrf.mxu0 }
  0xe4   :  { %v583_v44 = vpop.f32.mrf.mxu0 }
  0xe5   :  { %v617_v45 = vpop.f32.mrf.mxu1  ;;  %v584_v47 = vadd.f32 %v583_v44, %v582_v43 }
  0xe7   :  { %v618_v49 = vpop.f32.mrf.mxu1  ;;  %v260_v52 = vadd.f32 %v584_v47, %v549_v48 }
  0xe8   :  { %v619_v53 = vadd.f32 %v618_v49, %v617_v45 }
  0xea   :  { %v330_v56 = vadd.f32 %v619_v53, %v260_v52 }
 0x104   :  { %v652_v46 = vpop.f32.mrf.mxu0 }
 0x106   :  { %v653_v50 = vpop.f32.mrf.mxu0 }
 0x107   :  { %v687_v51 = vpop.f32.mrf.mxu1  ;;  %v654_v54 = vadd.f32 %v653_v50, %v652_v46 }
 0x109   :  { %v688_v55 = vpop.f32.mrf.mxu1  ;;  %v400_v57 = vadd.f32 %v654_v54, %v330_v56 }
 0x10a   :  { %v689_v58 = vadd.f32 %v688_v55, %v687_v51 }
 0x10c   :  { %v470_v61 = vadd.f32 %v689_v58, %v400_v57 }
 0x126   :  { %v722_v59 = vpop.f32.mrf.mxu0 }
 0x128   :  { %v723_v60 = vpop.f32.mrf.mxu0 }
 0x129   :  { %v724_v62 = vadd.f32 %v723_v60, %v722_v59 }
 0x12b   :  { %v540_v63 = vadd.f32 %v724_v62, %v470_v61 }
 0x12d   :  { %544 = vst.msk [vmem:[%s1264_s3] sm:$0xff] %vm543_vm0, %v540_v63 }

</bundles_post_ra>
